<compile_context>
chip_gen: v6e
topology: v6e:2x2x1
jax: 0.10.0
libtpu: 0.0.40
codegen_flags: <defaults>
</compile_context>

<pallas_src>
import jax
import jax.numpy as jnp
from jax import lax
from jax.experimental import pallas as pl
from jax.experimental.pallas import tpu as pltpu

OBS_SIZE = 7 * 7          # forward hard-codes x.view(-1, 7*7)
INNER_SIZE = 32
ACT_SIZE = 4

MIN_PALLAS_BATCH = 2048            # below this, XLA fusion beats kernel launch cost
_FALLBACK_VMEM_BYTES = 64 * 1024 * 1024


def _cdiv(a, b):
    return -(-a // b)


def _round_up(a, m):
    return _cdiv(a, m) * m


def _vmem_capacity_bytes():
    try:
        cap = getattr(pltpu.get_tpu_info(), "vmem_capacity_bytes", None)
        if cap:
            return int(cap)
    except Exception:
        pass
    return _FALLBACK_VMEM_BYTES


def _default_tiling():
    """(max_batch_tile, vmem_limit_bytes) sized to this chip's VMEM.

    v5e/v6e (128 MiB VMEM): 16384-row tiles (~3.4 MB HBM traffic/step => the
    ~0.35 us per-step pipeline overhead is <10% even at 1.4 TB/s); limit 80 MiB.
    v7x (64 MiB VMEM): 8192-row tiles, limit 40 MiB (buffers + temporaries stay
    well under the physical 64 MiB while 3.2 TB/s keeps steps ~0.5 us+).
    """
    cap = _vmem_capacity_bytes()
    if cap >= 100 * 1024 * 1024:
        return 16384, 80 * 1024 * 1024
    return 8192, 40 * 1024 * 1024


def policy_kernel(x_ref, w1_ref, b1_ref, w2_ref, b2_ref, o_ref):
    # x_ref:  (tb, 49)  activation tile, marches along the batch (double-buffered)
    # w1_ref: (49, 32)  b1_ref: (1, 32)    -- constant index_map => VMEM-resident
    # w2_ref: (4, 32)   b2_ref: (4, 1)        (w2 kept in PyTorch [out, in] layout)
    # o_ref:  (4, tb)   lane-dense act-major output tile (batch on lanes)
    x = x_ref[...]
    h = jnp.dot(x, w1_ref[...], preferred_element_type=jnp.float32) + b1_ref[...]
    h = jnp.maximum(h, 0.0)                                        # F.relu
    # Contract w2's [in] dim against h's feature dim -> (ACT_SIZE, tb) directly, so
    # the output block is lane-dense instead of a 4-wide lane-padded block.
    out = lax.dot_general(w2_ref[...], h, (((1,), (1,)), ((), ())),
                          preferred_element_type=jnp.float32) + b2_ref[...]
    o_ref[...] = jnp.clip(out, -1000.0, 1000.0)                    # .clamp(+-1000)


def policy_forward(x, w1, b1, w2, b2, *,
                   max_batch_tile=None,
                   min_pallas_batch=MIN_PALLAS_BATCH,
                   vmem_limit_bytes=None,
                   act_major=False,
                   force_pallas=False):
    """Policy forward: clamp(relu(x @ W1^T + b1) @ W2^T + b2, -1000, 1000).

    x: any shape flattening to (-1, 49), mirrors x.view(-1, 7*7). bf16 x is
       consumed as-is (halves the dominant HBM read); f32 otherwise. No wrapper
       cast/pad passes over x are performed.
    w1: (INNER_SIZE, OBS_SIZE), b1: (INNER_SIZE,)   -- PyTorch nn.Linear layout
    w2: (ACT_SIZE, INNER_SIZE), b2: (ACT_SIZE,)
    act_major=True returns the kernel-native (ACT_SIZE, B) layout, skipping the
    final transpose (saves ~2*B*16 bytes of HBM for large B).
    """
    x2d = x.reshape(-1, OBS_SIZE)
    if x2d.dtype != jnp.bfloat16:
        x2d = x2d.astype(jnp.float32)
    B = x2d.shape[0]

    # Small-batch fast path: kernel launch + single-step pipeline overhead dominate
    # a problem whose HBM time is <1 us; XLA fuses Linear->ReLU->Linear->clamp fine.
    if B < min_pallas_batch and not force_pallas:
        h = jnp.maximum(x2d.astype(jnp.float32) @ w1.T.astype(jnp.float32) + b1, 0.0)
        out = jnp.clip(h @ w2.T.astype(jnp.float32) + b2, -1000.0, 1000.0)
        return out.T if act_major else out

    if max_batch_tile is None or vmem_limit_bytes is None:
        d_tile, d_vmem = _default_tiling()
        max_batch_tile = max_batch_tile or d_tile
        vmem_limit_bytes = vmem_limit_bytes or d_vmem

    # Batch tile: one step for B <= tile (blocks equal the full dims -> no padding);
    # otherwise bounded tiles with an even step count (balances the "parallel" axis
    # across v7x's two TensorCores; harmless on single-TC chips).
    if B <= max_batch_tile:
        tb = B
    else:
        steps = _cdiv(B, max_batch_tile)
        if steps % 2:
            steps += 1
        tb = _round_up(_cdiv(B, steps), 128)
    grid = (_cdiv(B, tb),)     # boundary block clipped by Pallas; no jnp.pad of x

    w1_t = w1.T.astype(x2d.dtype)                     # (49, 32) -- tiny transpose
    b1_2d = b1.reshape(1, INNER_SIZE).astype(jnp.float32)
    w2_f = w2.astype(jnp.float32)                     # (4, 32), PyTorch layout as-is
    b2_2d = b2.reshape(ACT_SIZE, 1).astype(jnp.float32)

    flops = 2 * B * (OBS_SIZE * INNER_SIZE + INNER_SIZE * ACT_SIZE)
    bytes_accessed = (B * OBS_SIZE * x2d.dtype.itemsize       # x read (dominant)
                      + B * ACT_SIZE * 4                      # output write
                      + OBS_SIZE * INNER_SIZE * w1_t.dtype.itemsize
                      + (INNER_SIZE + ACT_SIZE * INNER_SIZE + ACT_SIZE) * 4)

    out_t = pl.pallas_call(
        policy_kernel,
        out_shape=jax.ShapeDtypeStruct((ACT_SIZE, B), jnp.float32),
        grid_spec=pl.GridSpec(
            grid=grid,
            in_specs=[
                pl.BlockSpec((tb, OBS_SIZE), lambda i: (i, 0)),        # x marches
                pl.BlockSpec((OBS_SIZE, INNER_SIZE), lambda i: (0, 0)),
                pl.BlockSpec((1, INNER_SIZE), lambda i: (0, 0)),
                pl.BlockSpec((ACT_SIZE, INNER_SIZE), lambda i: (0, 0)),
                pl.BlockSpec((ACT_SIZE, 1), lambda i: (0, 0)),
            ],
            out_specs=pl.BlockSpec((ACT_SIZE, tb), lambda i: (0, i)),
        ),
        compiler_params=pltpu.CompilerParams(
            dimension_semantics=("parallel",),
            vmem_limit_bytes=vmem_limit_bytes),
        cost_estimate=pl.CostEstimate(
            flops=flops, transcendentals=0, bytes_accessed=bytes_accessed),
    )(x2d, w1_t, b1_2d, w2_f, b2_2d)

    # Kernel-native layout is (ACT_SIZE, B); transpose back for nn.Linear parity.
    return out_t if act_major else out_t.T


def init_params(key):
    # Deterministic init mimicking nn.Linear default (uniform +/- 1/sqrt(fan_in)),
    # stored in PyTorch [out, in] layout.
    k1, k2, k3, k4 = jax.random.split(key, 4)
    bound1 = 1.0 / jnp.sqrt(OBS_SIZE)
    bound2 = 1.0 / jnp.sqrt(INNER_SIZE)
    w1 = jax.random.uniform(k1, (INNER_SIZE, OBS_SIZE), jnp.float32, -bound1, bound1)
    b1 = jax.random.uniform(k2, (INNER_SIZE,), jnp.float32, -bound1, bound1)
    w2 = jax.random.uniform(k3, (ACT_SIZE, INNER_SIZE), jnp.float32, -bound2, bound2)
    b2 = jax.random.uniform(k4, (ACT_SIZE,), jnp.float32, -bound2, bound2)
    return w1, b1, w2, b2


def _reference(x, w1, b1, w2, b2):
    x2d = x.reshape(-1, OBS_SIZE).astype(jnp.float32)
    h = jnp.maximum(x2d @ w1.T + b1, 0.0)
    return jnp.clip(h @ w2.T + b2, -1000.0, 1000.0)


if __name__ == "__main__":
    key = jax.random.PRNGKey(0)
    pkey, xk1, xk2 = jax.random.split(key, 3)
    w1, b1, w2, b2 = init_params(pkey)

    # 1) Small batch, single grid step (force_pallas so the kernel actually runs).
    B = 8
    x = jax.random.normal(xk1, (B, 7, 7), jnp.float32)
    out = jax.block_until_ready(policy_forward(x, w1, b1, w2, b2, force_pallas=True))
    ref = _reference(x, w1, b1, w2, b2)
    assert out.shape == (B, ACT_SIZE)
    assert jnp.allclose(out, ref, atol=1e-5, rtol=1e-5)

    # 2) Multi-step pipelined grid with a clipped (non-divisible) boundary block.
    B2 = 300
    x2 = jax.random.normal(xk2, (B2, 7, 7), jnp.float32)
    out2 = jax.block_until_ready(policy_forward(
        x2, w1, b1, w2, b2, max_batch_tile=128, force_pallas=True))
    ref2 = _reference(x2, w1, b1, w2, b2)
    assert out2.shape == (B2, ACT_SIZE)
    assert jnp.allclose(out2, ref2, atol=1e-5, rtol=1e-5)

    # 3) Act-major output path (no final transpose).
    out3 = jax.block_until_ready(policy_forward(
        x2, w1, b1, w2, b2, max_batch_tile=128, force_pallas=True, act_major=True))
    assert out3.shape == (ACT_SIZE, B2)
    assert jnp.allclose(out3.T, ref2, atol=1e-5, rtol=1e-5)

    # 4) Small-batch fast path (no kernel launch) still matches.
    out4 = jax.block_until_ready(policy_forward(x, w1, b1, w2, b2))
    assert jnp.allclose(out4, ref, atol=1e-5, rtol=1e-5)

    # 5) bf16 activations are consumed directly (no wrapper cast); f32 accumulation.
    x_bf16 = x2.astype(jnp.bfloat16)
    out5 = jax.block_until_ready(policy_forward(
        x_bf16, w1, b1, w2, b2, max_batch_tile=128, force_pallas=True))
    ref5 = _reference(x2.astype(jnp.bfloat16).astype(jnp.float32), w1, b1, w2, b2)
    assert jnp.allclose(out5, ref5, atol=2e-2, rtol=2e-2)

    print("KERNEL_OK")
</pallas_src>

<mosaic_0001>
module attributes {stable_mosaic.version = 11 : i64} {
  func.func @policy_kernel(%arg0: i32, %arg1: memref<8x49xf32, #tpu.memory_space<vmem>>, %arg2: memref<49x32xf32, #tpu.memory_space<vmem>>, %arg3: memref<1x32xf32, #tpu.memory_space<vmem>>, %arg4: memref<4x32xf32, #tpu.memory_space<vmem>>, %arg5: memref<4x1xf32, #tpu.memory_space<vmem>>, %arg6: memref<4x8xf32, #tpu.memory_space<vmem>>) attributes {dimension_semantics = [#tpu.dimension_semantics<parallel>], iteration_bounds = array<i64: 1>, scalar_prefetch = 0 : i64, scratch_operands = 0 : i64, tpu.core_type = #tpu.core_type<tc>, window_params = [{transform_indices = @transform_0, window_bounds = array<i64: 8, 49>}, {pipeline_mode = #tpu.pipeline_mode<synchronous>, transform_indices = @transform_1, window_bounds = array<i64: 49, 32>}, {pipeline_mode = #tpu.pipeline_mode<synchronous>, transform_indices = @transform_2, window_bounds = array<i64: 1, 32>}, {pipeline_mode = #tpu.pipeline_mode<synchronous>, transform_indices = @transform_3, window_bounds = array<i64: 4, 32>}, {pipeline_mode = #tpu.pipeline_mode<synchronous>, transform_indices = @transform_4, window_bounds = array<i64: 4, 1>}, {transform_indices = @transform_5, window_bounds = array<i64: 4, 8>}]} {
    %c0 = arith.constant 0 : index
    %c0_0 = arith.constant 0 : index
    %0 = vector.load %arg1[%c0, %c0_0] : memref<8x49xf32, #tpu.memory_space<vmem>>, vector<8x49xf32>
    %c0_1 = arith.constant 0 : index
    %c0_2 = arith.constant 0 : index
    %1 = vector.load %arg2[%c0_1, %c0_2] : memref<49x32xf32, #tpu.memory_space<vmem>>, vector<49x32xf32>
    %cst = arith.constant dense<0.000000e+00> : vector<8x32xf32>
    %2 = tpu.matmul %0, %1, %cst {dimension_numbers = #tpu.dot_dimension_numbers<[1], [0], [0], [1], [0, 0, 1, 1], [], []>} : vector<8x49xf32>, vector<49x32xf32>, vector<8x32xf32> -> vector<8x32xf32>
    %c0_3 = arith.constant 0 : index
    %c0_4 = arith.constant 0 : index
    %3 = vector.load %arg3[%c0_3, %c0_4] : memref<1x32xf32, #tpu.memory_space<vmem>>, vector<1x32xf32>
    %4 = vector.broadcast %3 : vector<1x32xf32> to vector<8x32xf32>
    %5 = arith.addf %2, %4 : vector<8x32xf32>
    %cst_5 = arith.constant 0.000000e+00 : f32
    %6 = vector.broadcast %cst_5 : f32 to vector<8x32xf32>
    %7 = arith.maximumf %5, %6 : vector<8x32xf32>
    %c0_6 = arith.constant 0 : index
    %c0_7 = arith.constant 0 : index
    %8 = vector.load %arg4[%c0_6, %c0_7] : memref<4x32xf32, #tpu.memory_space<vmem>>, vector<4x32xf32>
    %cst_8 = arith.constant dense<0.000000e+00> : vector<4x8xf32>
    %9 = tpu.matmul %8, %7, %cst_8 {dimension_numbers = #tpu.dot_dimension_numbers<[1], [1], [0], [0], [0, 0, 1, 0], [], []>} : vector<4x32xf32>, vector<8x32xf32>, vector<4x8xf32> -> vector<4x8xf32>
    %c0_9 = arith.constant 0 : index
    %c0_10 = arith.constant 0 : index
    %10 = vector.load %arg5[%c0_9, %c0_10] : memref<4x1xf32, #tpu.memory_space<vmem>>, vector<4x1xf32>
    %11 = vector.broadcast %10 : vector<4x1xf32> to vector<4x8xf32>
    %12 = arith.addf %9, %11 : vector<4x8xf32>
    %cst_11 = arith.constant -1.000000e+03 : f32
    %cst_12 = arith.constant 1.000000e+03 : f32
    %13 = vector.broadcast %cst_11 : f32 to vector<4x8xf32>
    %14 = arith.maximumf %13, %12 : vector<4x8xf32>
    %15 = vector.broadcast %cst_12 : f32 to vector<4x8xf32>
    %16 = arith.minimumf %15, %14 : vector<4x8xf32>
    %c0_13 = arith.constant 0 : index
    %c0_14 = arith.constant 0 : index
    %17 = vector.load %arg6[%c0_13, %c0_14] : memref<4x8xf32, #tpu.memory_space<vmem>>, vector<4x8xf32>
    tpu.vector_store %arg6[%c0_13, %c0_14], %16 {strides = array<i32>} : memref<4x8xf32, #tpu.memory_space<vmem>>, vector<4x8xf32>,
    return
  }
  func.func @transform_0(%arg0: i32) -> (i32, i32) {
    %c0_i32 = arith.constant 0 : i32
    %c0_i32_0 = arith.constant 0 : i32
    return %arg0, %c0_i32 : i32, i32
  }
  func.func @transform_1(%arg0: i32) -> (i32, i32) {
    %c0_i32 = arith.constant 0 : i32
    %c0_i32_0 = arith.constant 0 : i32
    %c0_i32_1 = arith.constant 0 : i32
    return %c0_i32, %c0_i32_0 : i32, i32
  }
  func.func @transform_2(%arg0: i32) -> (i32, i32) {
    %c0_i32 = arith.constant 0 : i32
    %c0_i32_0 = arith.constant 0 : i32
    %c0_i32_1 = arith.constant 0 : i32
    return %c0_i32, %c0_i32_0 : i32, i32
  }
  func.func @transform_3(%arg0: i32) -> (i32, i32) {
    %c0_i32 = arith.constant 0 : i32
    %c0_i32_0 = arith.constant 0 : i32
    %c0_i32_1 = arith.constant 0 : i32
    return %c0_i32, %c0_i32_0 : i32, i32
  }
  func.func @transform_4(%arg0: i32) -> (i32, i32) {
    %c0_i32 = arith.constant 0 : i32
    %c0_i32_0 = arith.constant 0 : i32
    %c0_i32_1 = arith.constant 0 : i32
    return %c0_i32, %c0_i32_0 : i32, i32
  }
  func.func @transform_5(%arg0: i32) -> (i32, i32) {
    %c0_i32 = arith.constant 0 : i32
    %c0_i32_0 = arith.constant 0 : i32
    return %c0_i32, %arg0 : i32, i32
  }
}

</mosaic_0001>

<bundles_post_ra>
// kernel: tpu_custom_call.1
= control target key start
LH: loop header
LB: loop body
LE: loop exit
PB: predicated region body
PF: predicated region fallthrough
CT: control target
= control target key end

     0   :  { %vm40_vm0 = vcmask 1040384   ;;  %v282_v1 = vmov 0.0   ;;  %vm283_vm1 = vmmov 0   ;;  %s352_s0 = inlined_call_operand.vmem [shape: f32[8,49], index: 0, kind: input, shape index: {}]   ;;  %s353_s1 = inlined_call_operand.vmem [shape: f32[49,32], index: 1, kind: input, shape index: {}]   ;;  %s354_s2 = inlined_call_operand.vmem [shape: f32[1,32], index: 2, kind: input, shape index: {}]   ;;  %s355_s3 = inlined_call_operand.vmem [shape: f32[4,32], index: 3, kind: input, shape index: {}]   ;;  %s356_s4 = inlined_call_operand.vmem [shape: f32[4,1], index: 4, kind: input, shape index: {}]   ;;  %s357_s5 = inlined_call_operand.hbm [shape: f32[4,8], index: 5, kind: output, shape index: {}]  }
   0x1   :  { %v28_v0 = vld [vmem:[%s353_s1 + $0x30] sm:$0x1]  ;;  %233 = vmatprep.subr.mxu0 %v282_v1  ;;  %v27_v2 = vld [vmem:[%s353_s1 + $0x28] sm:$0xff]  ;;  %250 = vmatprep.subr.mxu1 %v282_v1  ;;  %v26_v3 = vld [vmem:[%s353_s1 + $0x20] sm:$0xff] }
   0x2   :  { %234 = vmatpush3.msk.msra.mxu0 %vm40_vm0, %v28_v0  ;;  %247 = vmatprep.mubr.msk.f32.mxu0 %vm283_vm1, %v282_v1 }
   0x3   :  { %235 = vmatprep.subr.mxu0 %v282_v1  ;;  %252 = vmatprep.mubr.msk.f32.mxu1 %vm283_vm1, %v282_v1 }
   0x4   :  { %10 = vsyncpa [#allocation3], 0  ;;  %236 = vmatpush3.msra.mxu0 %v27_v2  ;;  %v25_v4 = vld [vmem:[%s353_s1 + $0x18] sm:$0xff]  ;;  %v24_v5 = vld [vmem:[%s353_s1 + $0x10] sm:$0xff]  ;;  %vm36_vm2 = vcmask 400384   ;;  %v284_v10 = vmov 0  }
   0x5   :  { %237 = vmatprep.subr.mxu0 %v282_v1  ;;  %v23_v6 = vld [vmem:[%s353_s1 + $0x8] sm:$0xff]  ;;  %v22_v7 = vld [vmem:[%s353_s1] sm:$0xff]  ;;  %259 = vset.pattern.permute.xlu0 %v284_v10  ;;  %vm122_vm3 = vcmask 261120   ;;  %vm201_vm4 = vcmask 60416  }
   0x6   :  { %238 = vmatpush3.msra.mxu0 %v26_v3  ;;  %v21_v8 = vld [vmem:[%s352_s0] sm:$0xff] }
   0x7   :  { %239 = vmatprep.subr.mxu0 %v282_v1  ;;  %v116_v9 = vld [vmem:[%s356_s4] sm:$0xf]  ;;  %s285_s4 = smov [#allocation2]  }
   0x8   :  { %240 = vmatpush3.msra.mxu0 %v25_v4  ;;  %119 = vperm.xlu0 %259, %v116_v9   ;;  %v217_v11 = vld [vmem:[%s354_s2] ss:$0 sm:$0xff]  ;;  %s209_s13 = sshll.u32 %s285_s4, 4  ;;  %s210_s13 = int_to_ptr.vmem [resolvable:$true] %s209_s13 }
   0x9   :  { %241 = vmatprep.subr.mxu0 %v282_v1  ;;  %v115_v16 = vld [vmem:[%s355_s3] sm:$0xf]  ;;  %s260_s2 = scalar_lea.vmem %s210_s13, 64  ;;  %p265_p1 = scmp.lt.s32.totalorder %s210_s13, %s210_s13 }
   0xa   :  { %242 = vmatpush3.msra.mxu0 %v24_v5  ;;  %p261_p0 = scmp.ne.s32.totalorder %s210_s13, %s260_s2  ;;  %p266_p2 = scmp.lt.s32.totalorder %s260_s2, %s260_s2 }
   0xb   :  { %243 = vmatprep.subr.mxu0 %v282_v1 }
   0xc   :  { %244 = vmatpush3.msra.mxu0 %v23_v6  ;;  %p267_p3 = por %p266_p2, %p265_p1 }
   0xd   :  { %245 = vmatprep.subr.mxu0 %v282_v1 }
   0xe   :  { %246 = vmatpush3.msra.mxu0 %v22_v7  ;;  %p268_p4 = pnand %p267_p3, %p261_p0 }
   0xf   :  { %248 = vmatmul.mubr.msk.f32.vlgmr.msra.gmra.mxu0 %vm36_vm2, %v21_v8 }
  0x83   :  { %v120_v17 = vpop.permute.xlu0 %119 }
  0xcf   :  { %v110_v12 = vpop.f32.mrf.mxu0 }
  0xd0   :  { %v111_v13 = vadd.f32 %v217_v11, %v110_v12 }
  0xd1   :  { %v249_v14 = vpop.f32.mrf.mxu0 }
  0xd2   :  { %v114_v15 = vmax.f32 %v111_v13, 0.0 }
  0xd4   :  { %251 = vmatpush3.xpose.msk.msra.mxu1 %vm122_vm3, %v114_v15 }
  0xd7   :  { %253 = vmatmul.mubr.msk.f32.vlgmr.msra.gmra.mxu1 %vm122_vm3, %v115_v16 }
 0x197   :  { %v195_v18 = vpop.f32.mrf.mxu1 }
 0x198   :  { %v196_v19 = vadd.f32 %v195_v18, %v120_v17 }
 0x199   :  { %v254_v20 = vpop.f32.mrf.mxu1 }
 0x19a   :  { %v222_v21 = vclamps-f32 %v196_v19, 1000.0 }
 0x19c   :  { %202 = vst.msk [vmem:[#allocation2] sm:$0xf] %vm201_vm4, %v222_v21 }
 0x19d   :  { %271 = shalt.err (!%p268_p4)
}
 0x19e   :  { %212 = dma.vmem_to_hbm [thread:$0]  %s210_s13, 64, %s357_s5, [#allocation3]  }
 0x19f   :  { %280 = dma.done.wait [#allocation3], 64  }
 0x1a0   :  { %281 = vsyncadd [#allocation3], 4294967232 }
 0x1a1   :  { %216 = vsyncpa [#allocation3], 1 }

</bundles_post_ra>
